<compile_context>
chip_gen: v5e
topology: v5e:2x2
jax: 0.10.0
libtpu: 0.0.40
codegen_flags: <defaults>
</compile_context>

<pallas_src>
import math
import functools

import jax
import jax.numpy as jnp
from jax.experimental import pallas as pl
from jax.experimental.pallas import tpu as pltpu


def _build_pe(d_model: int, max_seq_len: int) -> jnp.ndarray:
    """Reproduce the PyTorch __init__ buffer exactly (float32).

    The torch double loop writes, for even column i:   sin(pos / 10000 ** (2*i     / d_model))
                          and for odd column i+1:      cos(pos / 10000 ** (2*(i+1) / d_model))
    i.e. every column c uses exponent 2*c/d_model (sin for even c, cos for odd c).
    """
    pos = jnp.arange(max_seq_len, dtype=jnp.float32)[:, None]          # (L, 1)
    col = jnp.arange(d_model, dtype=jnp.float32)[None, :]              # (1, D)
    inv_freq = jnp.power(10000.0, -2.0 * col / float(d_model))         # (1, D)
    angles = pos * inv_freq                                            # (L, D)
    pe = jnp.where((jnp.arange(d_model) % 2 == 0)[None, :],
                   jnp.sin(angles), jnp.cos(angles))
    return pe[None, :, :]                                              # (1, L, D)


def _pos_enc_kernel(x_ref, pe_ref, o_ref, *, scale):
    # Pure VPU elementwise; x and pe blocks have identical shapes (no broadcast needed).
    o_ref[...] = (x_ref[...] * scale + pe_ref[...]).astype(o_ref.dtype)


@functools.lru_cache(maxsize=None)
def _lane_block_elems() -> int:
    """Elements per block on the lane-dense path, sized for this TPU generation.

    Budget ~1/4 of physical VMEM for the stream pipeline (x + out double-buffered, pe,
    slack ~= 6 block-sized buffers): v5e/v6e (128 MiB) -> 1M elems (4 MiB f32) blocks,
    v7x (64 MiB per TensorCore) -> ~0.67M elems (~2.7 MiB).  Falls back to 2 MiB blocks
    if the hardware query is unavailable.
    """
    try:
        vmem_bytes = int(pltpu.get_tpu_info().vmem_capacity_bytes)
    except Exception:                                  # conservative default
        return 512 * 1024
    block_bytes = (vmem_bytes // 4) // 6
    return int(max(256 * 1024, min(1024 * 1024, block_bytes // 4)))


def _compiler_params(block_bytes: int) -> pltpu.CompilerParams:
    # x and out are double-buffered, pe is effectively resident; raise the scoped-VMEM
    # limit explicitly so 2-4 MiB blocks also clear v5e's 16 MiB default (physical VMEM
    # is 128 MiB there) while staying under v7x's 32 MiB scoped / 64 MiB physical.
    vmem_limit = int(min(32 << 20, max(16 << 20, 6 * block_bytes + (2 << 20))))
    return pltpu.CompilerParams(
        dimension_semantics=("parallel", "parallel"),
        vmem_limit_bytes=vmem_limit)


def positional_encoder(x: jnp.ndarray, pe: jnp.ndarray, d_model: int,
                       *, alias_out_to_x: bool = False) -> jnp.ndarray:
    """x: (B, S, D); pe: (1, max_seq_len, D) buffer.  Returns x*sqrt(d_model) + pe[:, :S].

    alias_out_to_x=True sets input_output_aliases={0: 0}; pair it with donate_argnums on
    x at the jit boundary so the output reuses x's HBM buffer (otherwise XLA inserts a
    defensive copy and nothing is saved).
    """
    B, S, D = x.shape
    assert D == d_model
    L = pe.shape[1]
    assert S <= L, f"seq_len {S} exceeds max_seq_len {L}"
    scale = math.sqrt(d_model)
    kernel = functools.partial(_pos_enc_kernel, scale=scale)
    itemsize = jnp.dtype(x.dtype).itemsize
    alias = {0: 0} if alias_out_to_x else {}
    N = S * D

    if N % 128 == 0:
        # ------------------------- lane-dense main path -------------------------
        # View each batch row's flattened (S*D,) stream as (R, tn) with tn a multiple of
        # 128 -> full-lane vregs and unmasked vector stores.  Prefer a tn that also
        # divides L*D so the *full* pe buffer reshapes for free (no HBM copy of the
        # prefix on the main path).
        tn = None
        for cand in (512, 256, 128):
            if N % cand == 0 and (L * D) % cand == 0:
                tn = cand
                break
        if tn is None:
            for cand in (512, 256, 128):
                if N % cand == 0:
                    tn = cand
                    break
        R = N // tn
        x3 = x.reshape(B, R, tn)                        # contiguous -> free reshape
        target_elems = _lane_block_elems()

        if R < 8 or R * tn <= target_elems:
            # Whole per-batch stream fits one block (or R is too small to split on
            # sublanes): single chunk per batch row, no ragged blocks possible.
            rb = R
            if (L * D) % tn == 0 and (R % 8 == 0 or (L * D) // tn == R):
                pe_view = pe.reshape(1, (L * D) // tn, tn)     # free reshape
            else:
                pe_view = pe[:, :S, :].reshape(1, R, tn)       # small one-time copy
        else:
            # Multiple row-chunks per batch row: rb must be a multiple of 8.  Prefer an
            # rb that divides R exactly (no padded last block / masked vst); only accept
            # divisors within ~25% of the target so blocks stay near the roofline size.
            rb = max(8, min((target_elems // tn) // 8 * 8, (R // 8) * 8))
            if R % rb != 0:
                lo = max(8, ((rb * 3) // 4) // 8 * 8)
                for cand in range(rb, lo - 1, -8):
                    if R % cand == 0:
                        rb = cand
                        break
            if (L * D) % tn == 0:
                pe_view = pe.reshape(1, (L * D) // tn, tn)     # free reshape
            else:
                pe_view = pe[:, :S, :].reshape(1, R, tn)       # rare one-time copy
            # NOTE: if rb still does not divide R, Pallas pads the last block; the
            # padded rows may read pe_view rows beyond S but their outputs are dropped.

        num_r_blocks = pl.cdiv(R, rb)

        # Grid ordering: row-chunk axis outer / batch inner keeps the pe block index
        # constant across the inner loop, so pe is only (re-)fetched once per chunk.
        # When there is a single chunk, put batch on the leading axis instead so v7x
        # megacore sharding splits real work across both TensorCores (pe residency is
        # unaffected: its block index is constant either way).
        if num_r_blocks == 1:
            grid = (B, 1)
            x_map = lambda b, r: (b, r, 0)
            pe_map = lambda b, r: (0, r, 0)
        else:
            grid = (num_r_blocks, B)
            x_map = lambda r, b: (b, r, 0)
            pe_map = lambda r, b: (0, r, 0)

        out3 = pl.pallas_call(
            kernel,
            out_shape=jax.ShapeDtypeStruct((B, R, tn), x.dtype),
            grid_spec=pltpu.PrefetchScalarGridSpec(
                num_scalar_prefetch=0,
                grid=grid,
                in_specs=[
                    pl.BlockSpec((1, rb, tn), x_map),     # x
                    pl.BlockSpec((1, rb, tn), pe_map),    # pe (broadcast over batch)
                ],
                out_specs=pl.BlockSpec((1, rb, tn), x_map),
            ),
            compiler_params=_compiler_params(rb * tn * itemsize),
            input_output_aliases=alias,
        )(x3, pe_view)
        return out3.reshape(B, S, D)

    # ---------------- correctness fallback (S*D not a multiple of 128) ----------------
    # D stays whole on the lane axis (masked partial stores are unavoidable when
    # D % 128 != 0); S is tiled in multiples of 8 so long sequences never demand a whole
    # (S, D) slab of VMEM per step.
    if S >= 8:
        sb = max(8, min((S // 8) * 8, ((2 << 20) // max(D * itemsize, 1)) // 8 * 8))
    else:
        sb = S
    ns = pl.cdiv(S, sb)
    # pe's block row-dim must be a multiple of 8 or its full extent; slice only when
    # neither holds (tiny one-time copy for S < 8).
    pe_in = pe if (sb % 8 == 0 or sb == L) else pe[:, :S, :]

    if ns == 1:
        grid = (B, 1)
        x_map = lambda b, s: (b, s, 0)
        pe_map = lambda b, s: (0, s, 0)
    else:
        grid = (ns, B)
        x_map = lambda s, b: (b, s, 0)
        pe_map = lambda s, b: (0, s, 0)

    return pl.pallas_call(
        kernel,
        out_shape=jax.ShapeDtypeStruct((B, S, D), x.dtype),
        grid_spec=pltpu.PrefetchScalarGridSpec(
            num_scalar_prefetch=0,
            grid=grid,
            in_specs=[
                pl.BlockSpec((1, sb, D), x_map),
                pl.BlockSpec((1, sb, D), pe_map),
            ],
            out_specs=pl.BlockSpec((1, sb, D), x_map),
        ),
        compiler_params=_compiler_params(sb * D * itemsize),
        input_output_aliases=alias,
    )(x, pe_in)


if __name__ == "__main__":
    pos_enc = jax.jit(positional_encoder, static_argnums=2)

    def check(B, S, d_model, max_seq_len=100, seed=0):
        pe = _build_pe(d_model, max_seq_len)
        x = jax.random.normal(jax.random.PRNGKey(seed), (B, S, d_model),
                              dtype=jnp.float32)
        out = jax.block_until_ready(pos_enc(x, pe, d_model))
        ref = x * math.sqrt(d_model) + pe[:, :S, :]
        assert out.shape == (B, S, d_model)
        assert jnp.allclose(out, ref, atol=1e-5, rtol=1e-5), \
            f"mismatch for shape {(B, S, d_model)}"

    # 1) required small shape (single chunk per batch row; batch-leading grid for v7x)
    check(B=2, S=8, d_model=32)
    # 2) lane-dense path with the free full-pe reshape (R a multiple of 8)
    check(B=2, S=32, d_model=32)
    # 3) lane-dense path, R=10 -> whole-row block (no ragged chunk), 3 batch rows
    check(B=3, S=40, d_model=32)
    # 4) fallback path (S*D not a multiple of 128, S < 8)
    check(B=2, S=5, d_model=24)
    # 5) fallback path with S tiled in multiples of 8
    check(B=2, S=24, d_model=24)

    # 6) output aliased onto donated x (drops the separate HBM output allocation)
    d_model = 32
    pe = _build_pe(d_model, 100)
    x = jax.random.normal(jax.random.PRNGKey(1), (2, 32, d_model), dtype=jnp.float32)
    ref = x * math.sqrt(d_model) + pe[:, :32, :]
    pos_enc_inplace = jax.jit(
        functools.partial(positional_encoder, alias_out_to_x=True),
        static_argnums=2, donate_argnums=0)
    out = jax.block_until_ready(pos_enc_inplace(x, pe, d_model))
    assert jnp.allclose(out, ref, atol=1e-5, rtol=1e-5)

    print("KERNEL_OK")
</pallas_src>

<mosaic_0001>
module attributes {stable_mosaic.version = 11 : i64} {
  func.func @_pos_enc_kernel(%arg0: i32, %arg1: i32, %arg2: memref<1x2x128xf32, #tpu.memory_space<vmem>>, %arg3: memref<1x2x128xf32, #tpu.memory_space<vmem>>, %arg4: memref<1x2x128xf32, #tpu.memory_space<vmem>>) attributes {dimension_semantics = [#tpu.dimension_semantics<parallel>, #tpu.dimension_semantics<parallel>], iteration_bounds = array<i64: 2, 1>, scalar_prefetch = 0 : i64, scratch_operands = 0 : i64, tpu.core_type = #tpu.core_type<tc>, window_params = [{transform_indices = @transform_0, window_bounds = array<i64: 1, 2, 128>}, {transform_indices = @transform_1, window_bounds = array<i64: 1, 2, 128>}, {transform_indices = @transform_2, window_bounds = array<i64: 1, 2, 128>}]} {
    %c0 = arith.constant 0 : index
    %c0_0 = arith.constant 0 : index
    %c0_1 = arith.constant 0 : index
    %0 = vector.load %arg2[%c0, %c0_0, %c0_1] : memref<1x2x128xf32, #tpu.memory_space<vmem>>, vector<1x2x128xf32>
    %cst = arith.constant 5.65685415 : f32
    %1 = vector.broadcast %cst : f32 to vector<1x2x128xf32>
    %2 = arith.mulf %0, %1 : vector<1x2x128xf32>
    %c0_2 = arith.constant 0 : index
    %c0_3 = arith.constant 0 : index
    %c0_4 = arith.constant 0 : index
    %3 = vector.load %arg3[%c0_2, %c0_3, %c0_4] : memref<1x2x128xf32, #tpu.memory_space<vmem>>, vector<1x2x128xf32>
    %4 = arith.addf %2, %3 : vector<1x2x128xf32>
    %c0_5 = arith.constant 0 : index
    %c0_6 = arith.constant 0 : index
    %c0_7 = arith.constant 0 : index
    %5 = vector.load %arg4[%c0_5, %c0_6, %c0_7] : memref<1x2x128xf32, #tpu.memory_space<vmem>>, vector<1x2x128xf32>
    tpu.vector_store %arg4[%c0_5, %c0_6, %c0_7], %4 {strides = array<i32>} : memref<1x2x128xf32, #tpu.memory_space<vmem>>, vector<1x2x128xf32>,
    return
  }
  func.func @transform_0(%arg0: i32, %arg1: i32) -> (i32, i32, i32) {
    %c0_i32 = arith.constant 0 : i32
    %c0_i32_0 = arith.constant 0 : i32
    return %arg0, %arg1, %c0_i32 : i32, i32, i32
  }
  func.func @transform_1(%arg0: i32, %arg1: i32) -> (i32, i32, i32) {
    %c0_i32 = arith.constant 0 : i32
    %c0_i32_0 = arith.constant 0 : i32
    %c0_i32_1 = arith.constant 0 : i32
    return %c0_i32, %arg1, %c0_i32_0 : i32, i32, i32
  }
  func.func @transform_2(%arg0: i32, %arg1: i32) -> (i32, i32, i32) {
    %c0_i32 = arith.constant 0 : i32
    %c0_i32_0 = arith.constant 0 : i32
    return %arg0, %arg1, %c0_i32 : i32, i32, i32
  }
}

</mosaic_0001>

<bundles_post_ra>
// kernel: positional_encoder.1
= control target key start
LH: loop header
LB: loop body
LE: loop exit
PB: predicated region body
PF: predicated region fallthrough
CT: control target
= control target key end

     0   :  { %s355_s9 = smov 0   ;;  %s357_s10 = smov 0   ;;  %s374_s0 = inlined_call_operand.vmem [shape: f32[2,2,128], index: 0, kind: input, shape index: {}]   ;;  %s375_s1 = inlined_call_operand.vmem [shape: f32[1,2,128], index: 1, kind: input, shape index: {}]   ;;  %s376_s2 = inlined_call_operand.vmem [shape: f32[2,2,128], index: 2, kind: output, shape index: {}]  }
   0x1   :  { %s336_s11 = smov 0  }
   0x2 LB: > { %s24_s12 = sadd.s32 1, %s334_s10  ;;  %p287_p0 = scmp.ge.s32.totalorder %s338_s11, 1  ;;  %s338_s11 = sphi %s336_s11, %s12_s11   ;;  %s334_s10 = sphi %s357_s10, %s378_s10   ;;  %s330_s9 = sphi %s355_s9, %s377_s9  }
   0x3   : > { %p26_p1 = scmp.ge.s32.totalorder %s24_s12, 2  ;;  %p139_p2 = scmp.lt.s32.totalorder %s338_s11, 3 }
   0x5   : > { %s380_s12 = smov (%p26_p1, %s24_s12), 0  ;;  %p140_p3 = pnand %p287_p0, %p139_p2 }
   0x6   : > { %p169_p4 = scmp.lt.s32.totalorder (!%p140_p3), %s330_s9, 1 }
   0x7   : > { %143 = sbr.rel (%p140_p3) target bundleno = 21 (0x15), region = 28 }
   0xc   : > { %s382_s9 = smov (!%p169_p4, %s330_s9), 1  ;;  %v189_v1 = vld [vmem:[%s375_s1] sm:$0x3] }
   0xd   : > { %s288_s13 = sshll.u32 %s382_s9, 1 }
   0xe   : > { %s175_s16 = scalar_lea.vmem %s374_s0, %s288_s13  ;;  %s186_s21 = scalar_lea.vmem %s376_s2, %s288_s13 }
   0xf   : > { %v187_v0 = vld [vmem:[%s175_s16] sm:$0x3] }
  0x10   : > { %v188_v2 = vmul.f32 5.656854, %v187_v0 }
  0x12   : > { %v190_v3 = vadd.f32 %v189_v1, %v188_v2 }
  0x14   : > { %191 = vst [vmem:[%s186_s21] sm:$0x3] %v190_v3 }
  0x15 PF: > { %s12_s11 = sadd.s32 1, %s338_s11   ;;  %s377_s9 = smov %s334_s10 }
  0x16   : > { %p9_p5 = scmp.ge.s32.totalorder %s12_s11, 4   ;;  %s378_s10 = smov %s380_s12 }
  0x18   :  { %11 = sbr.rel (!%p9_p5) target bundleno = 2 (0x2), region = 61 }

</bundles_post_ra>
